<compile_context>
chip_gen: v6e
topology: v6e:2x2x1
jax: 0.10.0
libtpu: 0.0.40
codegen_flags: <defaults>
</compile_context>

<pallas_src>
import functools

import jax
import jax.numpy as jnp
from jax.experimental import pallas as pl
from jax.experimental.pallas import tpu as pltpu

LANE = 128  # TPU vreg lane width


def _meta_inter_kernel(params_ref, x_ref, o_ref, *, num_grids):
    """Fused MetaInter forward on one lane-dense (TILE_R, 128) block.

    params_ref (SMEM, f32[2*G + 3]):
      [0:G]     grid points g_k
      [G:2G]    folded spline weights v_k = (spline_w @ w_lin)[k]
      [2G]      a = w_base @ w_lin
      [2G+1]    c = b_base @ w_lin + b_lin
      [2G+2]    inv_h = (G-1) / (grid_max - grid_min)
    """
    G = num_grids
    x = x_ref[...]                                    # (TR, 128) f32

    a = params_ref[2 * G]
    c = params_ref[2 * G + 1]
    inv_h = params_ref[2 * G + 2]

    # Base branch with the output Linear folded in: silu(x) * a + c
    sig_x = 1.0 / (1.0 + jnp.exp(-x))                 # exact sigmoid (EUP exp + divide)
    acc = (x * sig_x) * a + c                         # (TR, 128)

    # KAN branch: sum_k exp(-((x - g_k) * inv_h)^2) * v_k  (G is tiny -> unroll)
    for k in range(G):
        d = (x - params_ref[k]) * inv_h
        acc = acc + jnp.exp(-(d * d)) * params_ref[G + k]

    # Final sigmoid.
    o_ref[...] = 1.0 / (1.0 + jnp.exp(-acc))


def meta_inter_forward(x, grid_pts, spline_w, w_base, b_base, w_lin, b_lin,
                       grid_min, grid_max, num_grids, *, max_tile_rows=512):
    """MetaInter forward. x: (N, 1) -> (N, 1)."""
    N = x.shape[0]
    G = int(num_grids)
    H = spline_w.shape[1]
    f32 = jnp.float32

    x_flat = x.reshape(N).astype(f32)
    spline_w = spline_w.astype(f32)                   # (G, H)
    w_base_v = w_base.reshape(H).astype(f32)          # (H,)  Linear(1,H) weight
    b_base_v = b_base.reshape(H).astype(f32)          # (H,)
    w_lin_v = w_lin.reshape(H).astype(f32)            # (H,)  Linear(H,1) weight
    b_lin_s = b_lin.reshape(()).astype(f32)           # ()

    # Fold the output Linear into the other weights (no nonlinearity between).
    v = spline_w @ w_lin_v                            # (G,)
    a = w_base_v @ w_lin_v                            # ()
    c = b_base_v @ w_lin_v + b_lin_s                  # ()
    inv_h = f32((num_grids - 1) / (grid_max - grid_min))
    params = jnp.concatenate([
        grid_pts.reshape(G).astype(f32),
        v.reshape(G),
        jnp.stack([a, c, inv_h]).astype(f32),
    ])                                                # (2*G + 3,)

    # Lane-dense layout: batch -> (rows, 128); pad rows up to the tile size.
    rows = -(-N // LANE)
    if rows <= max_tile_rows:
        tile_rows = -(-rows // 8) * 8                 # round up to sublane multiple
    else:
        tile_rows = max_tile_rows                     # 512x128 f32 = 256 KiB / block
    rows_pad = -(-rows // tile_rows) * tile_rows
    n_pad = rows_pad * LANE
    x_pad = jnp.zeros((n_pad,), f32).at[:N].set(x_flat).reshape(rows_pad, LANE)

    kernel = functools.partial(_meta_inter_kernel, num_grids=G)

    out = pl.pallas_call(
        kernel,
        out_shape=jax.ShapeDtypeStruct((rows_pad, LANE), f32),
        grid_spec=pltpu.PrefetchScalarGridSpec(
            num_scalar_prefetch=0,
            grid=(rows_pad // tile_rows,),
            in_specs=[
                # Tiny parameter vector: whole array in SMEM, no VMEM tiling.
                pl.BlockSpec(memory_space=pltpu.MemorySpace.SMEM),
                # Lane-dense input block.
                pl.BlockSpec((tile_rows, LANE), lambda i: (i, 0)),
            ],
            out_specs=pl.BlockSpec((tile_rows, LANE), lambda i: (i, 0)),
        ),
        compiler_params=pltpu.CompilerParams(
            dimension_semantics=("parallel",)),       # megacore sharding on v7x
    )(params, x_pad)

    return out.reshape(n_pad)[:N].reshape(N, 1)


def meta_inter_reference(x, grid_pts, spline_w, w_base, b_base, w_lin, b_lin,
                         grid_min, grid_max, num_grids):
    """Pure-JAX reference matching the PyTorch module (non-collapsed form)."""
    h_scale = (grid_max - grid_min) / (num_grids - 1)
    basis = jnp.exp(-(((x[:, :, None] - grid_pts) / h_scale) ** 2))   # (N,1,G)
    ret = basis.reshape(x.shape[0], -1) @ spline_w                    # (N,H)
    silu = x * jax.nn.sigmoid(x)
    base = silu @ w_base + b_base                                     # (N,H)
    out = (ret + base) @ w_lin + b_lin                                # (N,1)
    return jax.nn.sigmoid(out)


if __name__ == "__main__":
    # Small-but-representative sizes; N deliberately NOT a multiple of 128 to
    # exercise the padding path. hidden=32, num_grids=8.
    N = 300
    hidden_size = 32
    grid_min, grid_max = -2.0, 2.0
    num_grids = 8
    spline_scale = 0.1

    key = jax.random.PRNGKey(0)
    k_x, k_spl, k_wb, k_bb, k_wl, k_bl = jax.random.split(key, 6)

    # Deterministic parameter init (shapes follow the PyTorch module __init__,
    # with Linear weights stored transposed as (in, out)).
    grid_pts = jnp.linspace(grid_min, grid_max, num_grids, dtype=jnp.float32)      # (G,)
    spline_w = jax.random.normal(k_spl, (1 * num_grids, hidden_size),
                                 dtype=jnp.float32) * spline_scale                 # (G,H)
    w_base = jax.random.normal(k_wb, (1, hidden_size), dtype=jnp.float32) * 0.5    # Linear(1,H)^T
    b_base = jax.random.normal(k_bb, (hidden_size,), dtype=jnp.float32) * 0.1
    w_lin = jax.random.normal(k_wl, (hidden_size, 1), dtype=jnp.float32) * 0.2     # Linear(H,1)^T
    b_lin = jax.random.normal(k_bl, (1,), dtype=jnp.float32) * 0.1

    x = jax.random.normal(k_x, (N, 1), dtype=jnp.float32)

    out = meta_inter_forward(x, grid_pts, spline_w, w_base, b_base, w_lin,
                             b_lin, grid_min, grid_max, num_grids)
    out = jax.block_until_ready(out)

    ref = meta_inter_reference(x, grid_pts, spline_w, w_base, b_base, w_lin,
                               b_lin, grid_min, grid_max, num_grids)
    assert out.shape == (N, 1)
    # Slightly looser tolerance: folding w_lin into the weights reassociates
    # the f32 reduction over the hidden dimension.
    assert jnp.allclose(out, ref, atol=2e-5, rtol=2e-5), "mismatch vs reference"

    print("KERNEL_OK")
</pallas_src>

<mosaic_0001>
module attributes {stable_mosaic.version = 11 : i64} {
  func.func @_meta_inter_kernel(%arg0: i32, %arg1: memref<19xf32, #tpu.memory_space<smem>>, %arg2: memref<8x128xf32, #tpu.memory_space<vmem>>, %arg3: memref<8x128xf32, #tpu.memory_space<vmem>>) attributes {dimension_semantics = [#tpu.dimension_semantics<parallel>], iteration_bounds = array<i64: 1>, scalar_prefetch = 0 : i64, scratch_operands = 0 : i64, tpu.core_type = #tpu.core_type<tc>, window_params = [{transform_indices = @transform_0, window_bounds = array<i64: 19>}, {transform_indices = @transform_1, window_bounds = array<i64: 8, 128>}, {transform_indices = @transform_2, window_bounds = array<i64: 8, 128>}]} {
    %c0 = arith.constant 0 : index
    %c0_0 = arith.constant 0 : index
    %0 = vector.load %arg2[%c0, %c0_0] : memref<8x128xf32, #tpu.memory_space<vmem>>, vector<8x128xf32>
    %c16 = arith.constant 16 : index
    %1 = memref.load %arg1[%c16] : memref<19xf32, #tpu.memory_space<smem>>
    %c17 = arith.constant 17 : index
    %2 = memref.load %arg1[%c17] : memref<19xf32, #tpu.memory_space<smem>>
    %c18 = arith.constant 18 : index
    %3 = memref.load %arg1[%c18] : memref<19xf32, #tpu.memory_space<smem>>
    %cst = arith.constant 0.000000e+00 : f32
    %4 = vector.broadcast %cst : f32 to vector<8x128xf32>
    %5 = arith.subf %4, %0 : vector<8x128xf32>
    %6 = math.exp %5 : vector<8x128xf32>
    %cst_1 = arith.constant 1.000000e+00 : f32
    %7 = vector.broadcast %cst_1 : f32 to vector<8x128xf32>
    %8 = arith.addf %7, %6 : vector<8x128xf32>
    %cst_2 = arith.constant 1.000000e+00 : f32
    %9 = vector.broadcast %cst_2 : f32 to vector<8x128xf32>
    %10 = arith.divf %9, %8 : vector<8x128xf32>
    %11 = arith.mulf %0, %10 : vector<8x128xf32>
    %12 = vector.broadcast %1 : f32 to vector<8x128xf32>
    %13 = arith.mulf %11, %12 : vector<8x128xf32>
    %14 = vector.broadcast %2 : f32 to vector<8x128xf32>
    %15 = arith.addf %13, %14 : vector<8x128xf32>
    %c0_3 = arith.constant 0 : index
    %16 = memref.load %arg1[%c0_3] : memref<19xf32, #tpu.memory_space<smem>>
    %17 = vector.broadcast %16 : f32 to vector<8x128xf32>
    %18 = arith.subf %0, %17 : vector<8x128xf32>
    %19 = vector.broadcast %3 : f32 to vector<8x128xf32>
    %20 = arith.mulf %18, %19 : vector<8x128xf32>
    %21 = arith.mulf %20, %20 : vector<8x128xf32>
    %cst_4 = arith.constant 0.000000e+00 : f32
    %22 = vector.broadcast %cst_4 : f32 to vector<8x128xf32>
    %23 = arith.subf %22, %21 : vector<8x128xf32>
    %24 = math.exp %23 : vector<8x128xf32>
    %c8 = arith.constant 8 : index
    %25 = memref.load %arg1[%c8] : memref<19xf32, #tpu.memory_space<smem>>
    %26 = vector.broadcast %25 : f32 to vector<8x128xf32>
    %27 = arith.mulf %24, %26 : vector<8x128xf32>
    %28 = arith.addf %15, %27 : vector<8x128xf32>
    %c1 = arith.constant 1 : index
    %29 = memref.load %arg1[%c1] : memref<19xf32, #tpu.memory_space<smem>>
    %30 = vector.broadcast %29 : f32 to vector<8x128xf32>
    %31 = arith.subf %0, %30 : vector<8x128xf32>
    %32 = vector.broadcast %3 : f32 to vector<8x128xf32>
    %33 = arith.mulf %31, %32 : vector<8x128xf32>
    %34 = arith.mulf %33, %33 : vector<8x128xf32>
    %cst_5 = arith.constant 0.000000e+00 : f32
    %35 = vector.broadcast %cst_5 : f32 to vector<8x128xf32>
    %36 = arith.subf %35, %34 : vector<8x128xf32>
    %37 = math.exp %36 : vector<8x128xf32>
    %c9 = arith.constant 9 : index
    %38 = memref.load %arg1[%c9] : memref<19xf32, #tpu.memory_space<smem>>
    %39 = vector.broadcast %38 : f32 to vector<8x128xf32>
    %40 = arith.mulf %37, %39 : vector<8x128xf32>
    %41 = arith.addf %28, %40 : vector<8x128xf32>
    %c2 = arith.constant 2 : index
    %42 = memref.load %arg1[%c2] : memref<19xf32, #tpu.memory_space<smem>>
    %43 = vector.broadcast %42 : f32 to vector<8x128xf32>
    %44 = arith.subf %0, %43 : vector<8x128xf32>
    %45 = vector.broadcast %3 : f32 to vector<8x128xf32>
    %46 = arith.mulf %44, %45 : vector<8x128xf32>
    %47 = arith.mulf %46, %46 : vector<8x128xf32>
    %cst_6 = arith.constant 0.000000e+00 : f32
    %48 = vector.broadcast %cst_6 : f32 to vector<8x128xf32>
    %49 = arith.subf %48, %47 : vector<8x128xf32>
    %50 = math.exp %49 : vector<8x128xf32>
    %c10 = arith.constant 10 : index
    %51 = memref.load %arg1[%c10] : memref<19xf32, #tpu.memory_space<smem>>
    %52 = vector.broadcast %51 : f32 to vector<8x128xf32>
    %53 = arith.mulf %50, %52 : vector<8x128xf32>
    %54 = arith.addf %41, %53 : vector<8x128xf32>
    %c3 = arith.constant 3 : index
    %55 = memref.load %arg1[%c3] : memref<19xf32, #tpu.memory_space<smem>>
    %56 = vector.broadcast %55 : f32 to vector<8x128xf32>
    %57 = arith.subf %0, %56 : vector<8x128xf32>
    %58 = vector.broadcast %3 : f32 to vector<8x128xf32>
    %59 = arith.mulf %57, %58 : vector<8x128xf32>
    %60 = arith.mulf %59, %59 : vector<8x128xf32>
    %cst_7 = arith.constant 0.000000e+00 : f32
    %61 = vector.broadcast %cst_7 : f32 to vector<8x128xf32>
    %62 = arith.subf %61, %60 : vector<8x128xf32>
    %63 = math.exp %62 : vector<8x128xf32>
    %c11 = arith.constant 11 : index
    %64 = memref.load %arg1[%c11] : memref<19xf32, #tpu.memory_space<smem>>
    %65 = vector.broadcast %64 : f32 to vector<8x128xf32>
    %66 = arith.mulf %63, %65 : vector<8x128xf32>
    %67 = arith.addf %54, %66 : vector<8x128xf32>
    %c4 = arith.constant 4 : index
    %68 = memref.load %arg1[%c4] : memref<19xf32, #tpu.memory_space<smem>>
    %69 = vector.broadcast %68 : f32 to vector<8x128xf32>
    %70 = arith.subf %0, %69 : vector<8x128xf32>
    %71 = vector.broadcast %3 : f32 to vector<8x128xf32>
    %72 = arith.mulf %70, %71 : vector<8x128xf32>
    %73 = arith.mulf %72, %72 : vector<8x128xf32>
    %cst_8 = arith.constant 0.000000e+00 : f32
    %74 = vector.broadcast %cst_8 : f32 to vector<8x128xf32>
    %75 = arith.subf %74, %73 : vector<8x128xf32>
    %76 = math.exp %75 : vector<8x128xf32>
    %c12 = arith.constant 12 : index
    %77 = memref.load %arg1[%c12] : memref<19xf32, #tpu.memory_space<smem>>
    %78 = vector.broadcast %77 : f32 to vector<8x128xf32>
    %79 = arith.mulf %76, %78 : vector<8x128xf32>
    %80 = arith.addf %67, %79 : vector<8x128xf32>
    %c5 = arith.constant 5 : index
    %81 = memref.load %arg1[%c5] : memref<19xf32, #tpu.memory_space<smem>>
    %82 = vector.broadcast %81 : f32 to vector<8x128xf32>
    %83 = arith.subf %0, %82 : vector<8x128xf32>
    %84 = vector.broadcast %3 : f32 to vector<8x128xf32>
    %85 = arith.mulf %83, %84 : vector<8x128xf32>
    %86 = arith.mulf %85, %85 : vector<8x128xf32>
    %cst_9 = arith.constant 0.000000e+00 : f32
    %87 = vector.broadcast %cst_9 : f32 to vector<8x128xf32>
    %88 = arith.subf %87, %86 : vector<8x128xf32>
    %89 = math.exp %88 : vector<8x128xf32>
    %c13 = arith.constant 13 : index
    %90 = memref.load %arg1[%c13] : memref<19xf32, #tpu.memory_space<smem>>
    %91 = vector.broadcast %90 : f32 to vector<8x128xf32>
    %92 = arith.mulf %89, %91 : vector<8x128xf32>
    %93 = arith.addf %80, %92 : vector<8x128xf32>
    %c6 = arith.constant 6 : index
    %94 = memref.load %arg1[%c6] : memref<19xf32, #tpu.memory_space<smem>>
    %95 = vector.broadcast %94 : f32 to vector<8x128xf32>
    %96 = arith.subf %0, %95 : vector<8x128xf32>
    %97 = vector.broadcast %3 : f32 to vector<8x128xf32>
    %98 = arith.mulf %96, %97 : vector<8x128xf32>
    %99 = arith.mulf %98, %98 : vector<8x128xf32>
    %cst_10 = arith.constant 0.000000e+00 : f32
    %100 = vector.broadcast %cst_10 : f32 to vector<8x128xf32>
    %101 = arith.subf %100, %99 : vector<8x128xf32>
    %102 = math.exp %101 : vector<8x128xf32>
    %c14 = arith.constant 14 : index
    %103 = memref.load %arg1[%c14] : memref<19xf32, #tpu.memory_space<smem>>
    %104 = vector.broadcast %103 : f32 to vector<8x128xf32>
    %105 = arith.mulf %102, %104 : vector<8x128xf32>
    %106 = arith.addf %93, %105 : vector<8x128xf32>
    %c7 = arith.constant 7 : index
    %107 = memref.load %arg1[%c7] : memref<19xf32, #tpu.memory_space<smem>>
    %108 = vector.broadcast %107 : f32 to vector<8x128xf32>
    %109 = arith.subf %0, %108 : vector<8x128xf32>
    %110 = vector.broadcast %3 : f32 to vector<8x128xf32>
    %111 = arith.mulf %109, %110 : vector<8x128xf32>
    %112 = arith.mulf %111, %111 : vector<8x128xf32>
    %cst_11 = arith.constant 0.000000e+00 : f32
    %113 = vector.broadcast %cst_11 : f32 to vector<8x128xf32>
    %114 = arith.subf %113, %112 : vector<8x128xf32>
    %115 = math.exp %114 : vector<8x128xf32>
    %c15 = arith.constant 15 : index
    %116 = memref.load %arg1[%c15] : memref<19xf32, #tpu.memory_space<smem>>
    %117 = vector.broadcast %116 : f32 to vector<8x128xf32>
    %118 = arith.mulf %115, %117 : vector<8x128xf32>
    %119 = arith.addf %106, %118 : vector<8x128xf32>
    %cst_12 = arith.constant 0.000000e+00 : f32
    %120 = vector.broadcast %cst_12 : f32 to vector<8x128xf32>
    %121 = arith.subf %120, %119 : vector<8x128xf32>
    %122 = math.exp %121 : vector<8x128xf32>
    %cst_13 = arith.constant 1.000000e+00 : f32
    %123 = vector.broadcast %cst_13 : f32 to vector<8x128xf32>
    %124 = arith.addf %123, %122 : vector<8x128xf32>
    %cst_14 = arith.constant 1.000000e+00 : f32
    %125 = vector.broadcast %cst_14 : f32 to vector<8x128xf32>
    %126 = arith.divf %125, %124 : vector<8x128xf32>
    %c0_15 = arith.constant 0 : index
    %c0_16 = arith.constant 0 : index
    %127 = vector.load %arg3[%c0_15, %c0_16] : memref<8x128xf32, #tpu.memory_space<vmem>>, vector<8x128xf32>
    tpu.vector_store %arg3[%c0_15, %c0_16], %126 {strides = array<i32>} : memref<8x128xf32, #tpu.memory_space<vmem>>, vector<8x128xf32>,
    return
  }
  func.func @transform_0(%arg0: i32) -> i32 {
    %c0_i32 = arith.constant 0 : i32
    %c0_i32_0 = arith.constant 0 : i32
    return %c0_i32 : i32
  }
  func.func @transform_1(%arg0: i32) -> (i32, i32) {
    %c0_i32 = arith.constant 0 : i32
    %c0_i32_0 = arith.constant 0 : i32
    return %arg0, %c0_i32 : i32, i32
  }
  func.func @transform_2(%arg0: i32) -> (i32, i32) {
    %c0_i32 = arith.constant 0 : i32
    %c0_i32_0 = arith.constant 0 : i32
    return %arg0, %c0_i32 : i32, i32
  }
}

</mosaic_0001>

<bundles_post_ra>
// kernel: tpu_custom_call.1
= control target key start
LH: loop header
LB: loop body
LE: loop exit
PB: predicated region body
PF: predicated region fallthrough
CT: control target
= control target key end

     0   :  { %7 = vsyncpa [#allocation5], 0  ;;  %s317_s0 = inlined_call_operand.hbm [shape: f32[19], index: 0, kind: input, shape index: {}]   ;;  %s318_s1 = inlined_call_operand.hbm [shape: f32[8,128], index: 1, kind: input, shape index: {}]   ;;  %s319_s2 = inlined_call_operand.hbm [shape: f32[8,128], index: 2, kind: output, shape index: {}]  }
   0x1   :  { %8 = vsyncpa [#allocation3], 0 }
   0x2   :  { %9 = vsyncpa [#allocation4], 0  ;;  %s269_s9 = smov [#allocation2]   ;;  %s270_s12 = smov [#allocation6]  }
   0x3   :  { %17 = dma.hbm_to_smem %s317_s0, 16, %s269_s9, [#allocation5]  }
   0x4   :  { %s24_s13 = sshll.u32 %s270_s12, 4  ;;  %s25_s13 = int_to_ptr.vmem [resolvable:$true] %s24_s13 }
   0x5   :  { %s231_s14 = scalar_lea.vmem %s25_s13, 128  ;;  %p236_p1 = scmp.lt.s32.totalorder %s25_s13, %s25_s13 }
   0x6   :  { %p232_p0 = scmp.ne.s32.totalorder %s25_s13, %s231_s14  ;;  %p237_p2 = scmp.lt.s32.totalorder %s231_s14, %s231_s14 }
   0x8   :  { %p238_p3 = por %p237_p2, %p236_p1 }
   0xa   :  { %p239_p4 = pnand %p238_p3, %p232_p0 }
   0xc   :  { %242 = shalt.err (!%p239_p4)
}
   0xd   :  { %27 = dma.hbm_to_vmem [thread:$0]  %s318_s1, 128, %s25_s13, [#allocation3]  }
   0xe   :  { %263 = dma.done.wait [#allocation5], 16  }
   0xf   :  { %264 = vsyncadd [#allocation5], 4294967280 }
  0x10   :  { %265 = dma.done.wait [#allocation3], 128  }
  0x11   :  { %266 = vsyncadd [#allocation3], 4294967168 }
  0x12   :  { %34 = sfence }
  0x13   :  { %v293_v0 = vld [vmem:[#allocation6] sm:$0xff]  ;;  %s172_s0 = sld [smem:[#allocation2 + $0x12]]  ;;  %s271_s6 = smov [#allocation7]  }
  0x14   :  { %v39_v1 = vsub.f32 0.0, %v293_v0  ;;  %s50_s17 = sld [smem:[#allocation2]]  ;;  %s160_s7 = sshll.u32 %s271_s6, 4  ;;  %s161_s7 = int_to_ptr.vmem [resolvable:$true] %s160_s7 }
  0x15   :  { %s174_s18 = sld [smem:[#allocation2 + $0x1]]  ;;  %s243_s8 = scalar_lea.vmem %s161_s7, 128 }
  0x16   :  { %v40_v2 = vmul.f32 1.442695, %v39_v1  ;;  %s176_s19 = sld [smem:[#allocation2 + $0x2]]  ;;  %p244_p5 = scmp.ne.s32.totalorder %s161_s7, %s243_s8 }
  0x17   :  { %s178_s20 = sld [smem:[#allocation2 + $0x3]]  ;;  %p248_p6 = scmp.lt.s32.totalorder %s161_s7, %s161_s7 }
  0x18   :  { %191 = vpow2.f32 %v40_v2  ;;  %s180_s1 = sld [smem:[#allocation2 + $0x4]]  ;;  %p249_p7 = scmp.lt.s32.totalorder %s243_s8, %s243_s8 }
  0x19   :  { %v53_v4 = vstv %s172_s0  ;;  %s182_s21 = sld [smem:[#allocation2 + $0x5]] }
  0x1a   :  { %v51_v3 = vstv %s50_s17  ;;  %s184_s22 = sld [smem:[#allocation2 + $0x6]]  ;;  %p250_p8 = por %p249_p7, %p248_p6 }
  0x1b   :  { %v52_v5 = vsub.f32 %v293_v0, %v51_v3  ;;  %v64_v6 = vstv %s174_s18  ;;  %s186_s23 = sld [smem:[#allocation2 + $0x7]] }
  0x1c   :  { %v65_v8 = vsub.f32 %v293_v0, %v64_v6  ;;  %v76_v9 = vstv %s176_s19  ;;  %s303_s24 = sld [smem:[#allocation2 + $0x10]]  ;;  %p251_p9 = pnand %p250_p8, %p244_p5 }
  0x1d   :  { %v54_v7 = vmul.f32 %v53_v4, %v52_v5  ;;  %v77_v12 = vsub.f32 %v293_v0, %v76_v9  ;;  %v88_v13 = vstv %s178_s20  ;;  %s306_s25 = sld [smem:[#allocation2 + $0x8]] }
  0x1e   :  { %v66_v11 = vmul.f32 %v65_v8, %v53_v4  ;;  %v89_v17 = vsub.f32 %v293_v0, %v88_v13  ;;  %v100_v18 = vstv %s180_s1  ;;  %s308_s26 = sld [smem:[#allocation2 + $0x11]] }
  0x1f   :  { %v55_v10 = vmul.f32 %v54_v7, %v54_v7  ;;  %v78_v16 = vmul.f32 %v77_v12, %v53_v4  ;;  %v101_v25 = vsub.f32 %v293_v0, %v100_v18  ;;  %v112_v26 = vstv %s182_s21  ;;  %s175_s27 = sld [smem:[#allocation2 + $0x9]] }
  0x20   :  { %v67_v15 = vmul.f32 %v66_v11, %v66_v11  ;;  %v90_v23 = vmul.f32 %v89_v17, %v53_v4  ;;  %v113_v31 = vsub.f32 %v293_v0, %v112_v26  ;;  %v124_v34 = vstv %s184_s22  ;;  %s177_s28 = sld [smem:[#allocation2 + $0xa]] }
  0x21   :  { %v56_v14 = vsub.f32 0.0, %v55_v10  ;;  %v79_v22 = vmul.f32 %v78_v16, %v78_v16  ;;  %v102_v30 = vmul.f32 %v101_v25, %v53_v4  ;;  %v125_v37 = vsub.f32 %v293_v0, %v124_v34  ;;  %s179_s29 = sld [smem:[#allocation2 + $0xb]] }
  0x22   :  { %v68_v21 = vsub.f32 0.0, %v67_v15  ;;  %v91_v29 = vmul.f32 %v90_v23, %v90_v23  ;;  %v114_v36 = vmul.f32 %v113_v31, %v53_v4  ;;  %v136_v39 = vstv %s186_s23  ;;  %s181_s30 = sld [smem:[#allocation2 + $0xc]] }
  0x23   :  { %v57_v20 = vmul.f32 1.442695, %v56_v14  ;;  %v80_v28 = vsub.f32 0.0, %v79_v22  ;;  %v103_v35 = vmul.f32 %v102_v30, %v102_v30  ;;  %v126_v42 = vmul.f32 %v125_v37, %v53_v4  ;;  %s183_s3 = sld [smem:[#allocation2 + $0xd]] }
  0x24   :  { %v69_v27 = vmul.f32 1.442695, %v68_v21  ;;  %v92_v33 = vsub.f32 0.0, %v91_v29  ;;  %v115_v41 = vmul.f32 %v114_v36, %v114_v36  ;;  %v137_v43 = vsub.f32 %v293_v0, %v136_v39  ;;  %s185_s4 = sld [smem:[#allocation2 + $0xe]] }
  0x25   :  { %v192_v19 = vpop.eup %191  ;;  %193 = vpow2.f32 %v57_v20  ;;  %v81_v32 = vmul.f32 1.442695, %v80_v28  ;;  %v104_v40 = vsub.f32 0.0, %v103_v35  ;;  %v127_v46 = vmul.f32 %v126_v42, %v126_v42  ;;  %s187_s5 = sld [smem:[#allocation2 + $0xf]] }
  0x26   :  { %v42_v24 = vadd.f32 1.0, %v192_v19  ;;  %v93_v38 = vmul.f32 1.442695, %v92_v33  ;;  %v116_v45 = vsub.f32 0.0, %v115_v41  ;;  %v138_v47 = vmul.f32 %v137_v43, %v53_v4 }
  0x27   :  { %v105_v44 = vmul.f32 1.442695, %v104_v40  ;;  %v128_v49 = vsub.f32 0.0, %v127_v46  ;;  %v46_v56 = vstv %s303_s24  ;;  %v60_v57 = vstv %s306_s25 }
  0x28   :  { %195 = vrcp.f32 %v42_v24  ;;  %v117_v48 = vmul.f32 1.442695, %v116_v45  ;;  %v139_v50 = vmul.f32 %v138_v47, %v138_v47  ;;  %v48_v60 = vstv %s308_s26 }
  0x29   :  { %197 = vpow2.f32 %v69_v27  ;;  %v129_v51 = vmul.f32 1.442695, %v128_v49  ;;  %v72_v61 = vstv %s175_s27  ;;  %v84_v2 = vstv %s177_s28 }
  0x2a   :  { %199 = vpow2.f32 %v81_v32  ;;  %v140_v52 = vsub.f32 0.0, %v139_v50  ;;  %v96_v6 = vstv %s179_s29  ;;  %v108_v10 = vstv %s181_s30 }
  0x2b   :  { %201 = vpow2.f32 %v93_v38  ;;  %v120_v13 = vstv %s183_s3  ;;  %v132_v17 = vstv %s185_s4  ;;  %v144_v21 = vstv %s187_s5 }
  0x2c   :  { %203 = vpow2.f32 %v105_v44  ;;  %v141_v54 = vmul.f32 1.442695, %v140_v52 }
  0x2d   :  { %205 = vpow2.f32 %v117_v48 }
  0x2e   :  { %207 = vpow2.f32 %v129_v51 }
  0x2f   :  { %209 = vpow2.f32 %v141_v54 }
  0x32   :  { %v194_v53 = vpop.eup %193 }
  0x33   :  { %v61_v1 = vmul.f32 %v194_v53, %v60_v57 }
  0x35   :  { %v196_v55 = vpop.eup %195 }
  0x36   :  { %v45_v58 = vmul.f32 %v196_v55, %v293_v0  ;;  %v198_v59 = vpop.eup %197 }
  0x37   :  { %v200_v62 = vpop.eup %199  ;;  %v73_v5 = vmul.f32 %v198_v59, %v72_v61 }
  0x38   :  { %v47_v63 = vmul.f32 %v46_v56, %v45_v58  ;;  %v202_v3 = vpop.eup %201  ;;  %v85_v8 = vmul.f32 %v200_v62, %v84_v2 }
  0x39   :  { %v204_v9 = vpop.eup %203  ;;  %v97_v11 = vmul.f32 %v202_v3, %v96_v6 }
  0x3a   :  { %v49_v4 = vadd.f32 %v48_v60, %v47_v63  ;;  %v206_v12 = vpop.eup %205  ;;  %v109_v15 = vmul.f32 %v204_v9, %v108_v10 }
  0x3b   :  { %v208_v16 = vpop.eup %207  ;;  %v121_v19 = vmul.f32 %v206_v12, %v120_v13 }
  0x3c   :  { %v62_v7 = vadd.f32 %v61_v1, %v49_v4  ;;  %v210_v20 = vpop.eup %209  ;;  %v133_v23 = vmul.f32 %v208_v16, %v132_v17 }
  0x3d   :  { %v145_v25 = vmul.f32 %v210_v20, %v144_v21 }
  0x3e   :  { %v74_v0 = vadd.f32 %v73_v5, %v62_v7 }
  0x40   :  { %v86_v14 = vadd.f32 %v85_v8, %v74_v0 }
  0x42   :  { %v98_v18 = vadd.f32 %v97_v11, %v86_v14 }
  0x44   :  { %v110_v22 = vadd.f32 %v109_v15, %v98_v18 }
  0x46   :  { %v122_v24 = vadd.f32 %v121_v19, %v110_v22 }
  0x48   :  { %v134_v26 = vadd.f32 %v133_v23, %v122_v24 }
  0x4a   :  { %v146_v27 = vadd.f32 %v145_v25, %v134_v26 }
  0x4c   :  { %v147_v28 = vsub.f32 0.0, %v146_v27 }
  0x4e   :  { %v148_v29 = vmul.f32 1.442695, %v147_v28 }
  0x50   :  { %211 = vpow2.f32 %v148_v29 }
  0x5d   :  { %v212_v30 = vpop.eup %211 }
  0x5e   :  { %v150_v31 = vadd.f32 1.0, %v212_v30 }
  0x60   :  { %213 = vrcp.f32 %v150_v31 }
  0x6d   :  { %v214_v32 = vpop.eup %213 }
  0x6e   :  { %153 = vst [vmem:[#allocation7] sm:$0xff] %v214_v32 }
  0x6f   :  { %254 = shalt.err (!%p251_p9)
}
  0x70   :  { %163 = dma.vmem_to_hbm [thread:$0]  %s161_s7, 128, %s319_s2, [#allocation4]  }
  0x71   :  { %267 = dma.done.wait [#allocation4], 128  }
  0x72   :  { %268 = vsyncadd [#allocation4], 4294967168 }
  0x73   :  { %167 = vsyncpa [#allocation3], 1 }
  0x74   :  { %168 = vsyncpa [#allocation4], 1 }
  0x75   :  { %169 = vsyncpa [#allocation5], 1 }

</bundles_post_ra>
